<compile_context>
chip_gen: v5e
topology: v5e:2x2
jax: 0.10.0
libtpu: 0.0.40
codegen_flags: <defaults>
</compile_context>

<pallas_src>
import jax
import jax.numpy as jnp
from jax.experimental import pallas as pl
from jax.experimental.pallas import tpu as pltpu


def _round_up(v, m):
    return (v + m - 1) // m * m


def frozen_bn_kernel(scale_ref, shift_ref, x_ref, o_ref):
    # scale/shift: (tm, 1) float32 ; x/o: (tm, tl) in x.dtype
    scale = scale_ref[...]                       # (tm, 1) f32
    shift = shift_ref[...]                       # (tm, 1) f32
    x = x_ref[...].astype(jnp.float32)           # (tm, tl)
    o_ref[...] = (x * scale + shift).astype(o_ref.dtype)   # lane-broadcast FMA


def frozen_batch_norm_2d(x, weight, bias, running_mean, running_var,
                         *, eps=1e-5, lane_tile=1024,
                         target_block_bytes=1 << 20):
    N, C, H, W = x.shape
    HW = H * W
    R = N * C
    f32 = jnp.float32

    # --- per-channel affine, always in float32 (matches PyTorch fp32 params) ---
    scale = weight.astype(f32) * jax.lax.rsqrt(running_var.astype(f32) + f32(eps))
    shift = bias.astype(f32) - running_mean.astype(f32) * scale
    # one row per (n, c); row index = n * C + c  -> tile the (C,) vectors N times
    scale_r = jnp.tile(scale, N).reshape(R, 1)
    shift_r = jnp.tile(shift, N).reshape(R, 1)

    # --- lane-dense view of x ---
    xr = x.reshape(R, HW)

    # --- tile selection ---
    itemsize = jnp.dtype(x.dtype).itemsize
    row_unit = max(8, 32 // itemsize)            # 8 for f32, 16 for bf16, 32 for int8
    tl = min(lane_tile, _round_up(HW, 128))
    tl = _round_up(tl, 128)                      # lanes: multiple of 128
    tm = max(row_unit,
             (target_block_bytes // (tl * itemsize)) // row_unit * row_unit)
    tm = min(tm, _round_up(R, row_unit))         # rows: multiple of row_unit

    Rp = _round_up(R, tm)
    HWp = _round_up(HW, tl)
    pad_r, pad_l = Rp - R, HWp - HW
    if pad_r or pad_l:
        xr = jnp.pad(xr, ((0, pad_r), (0, pad_l)))
        scale_r = jnp.pad(scale_r, ((0, pad_r), (0, 0)))
        shift_r = jnp.pad(shift_r, ((0, pad_r), (0, 0)))

    grid = (Rp // tm, HWp // tl)
    x_spec = pl.BlockSpec((tm, tl), lambda r, l: (r, l))
    p_spec = pl.BlockSpec((tm, 1), lambda r, l: (r, 0))

    out = pl.pallas_call(
        frozen_bn_kernel,
        out_shape=jax.ShapeDtypeStruct((Rp, HWp), x.dtype),
        grid_spec=pltpu.PrefetchScalarGridSpec(
            num_scalar_prefetch=0,
            grid=grid,
            in_specs=[p_spec, p_spec, x_spec],
            out_specs=x_spec,
        ),
        compiler_params=pltpu.CompilerParams(
            dimension_semantics=("parallel", "parallel")),
    )(scale_r, shift_r, xr)

    if pad_r or pad_l:
        out = out[:R, :HW]
    return out.reshape(N, C, H, W)


def frozen_batch_norm_2d_ref(x, weight, bias, running_mean, running_var):
    eps = 1e-5
    w = weight.reshape(1, -1, 1, 1).astype(jnp.float32)
    b = bias.reshape(1, -1, 1, 1).astype(jnp.float32)
    rv = running_var.reshape(1, -1, 1, 1).astype(jnp.float32)
    rm = running_mean.reshape(1, -1, 1, 1).astype(jnp.float32)
    scale = w * jax.lax.rsqrt(rv + eps)
    y = x.astype(jnp.float32) * scale + (b - rm * scale)
    return y.astype(x.dtype)


if __name__ == "__main__":
    key = jax.random.PRNGKey(0)
    kx, kw, kb, km, kv = jax.random.split(key, 5)

    # primary test shape (matches spec example): (N, C, H, W) = (2, 4, 16, 16)
    N, C, H, W = 2, 4, 16, 16
    x = jax.random.normal(kx, (N, C, H, W), dtype=jnp.float32)
    weight = 1.0 + 0.1 * jax.random.normal(kw, (C,), dtype=jnp.float32)
    bias = 0.1 * jax.random.normal(kb, (C,), dtype=jnp.float32)
    running_mean = 0.05 * jax.random.normal(km, (C,), dtype=jnp.float32)
    running_var = 1.0 + 0.1 * jax.random.uniform(kv, (C,), dtype=jnp.float32)

    y = jax.block_until_ready(
        frozen_batch_norm_2d(x, weight, bias, running_mean, running_var))
    y_ref = frozen_batch_norm_2d_ref(x, weight, bias, running_mean, running_var)
    assert y.shape == (N, C, H, W) and y.dtype == x.dtype
    assert jnp.allclose(y, y_ref, atol=1e-5, rtol=1e-5)

    # second shape exercising the padding path (rows and lanes not tile-aligned)
    N2, C2, H2, W2 = 2, 3, 7, 7
    x2 = jax.random.normal(kx, (N2, C2, H2, W2), dtype=jnp.float32)
    w2 = 1.0 + 0.1 * jax.random.normal(kw, (C2,), dtype=jnp.float32)
    b2 = 0.1 * jax.random.normal(kb, (C2,), dtype=jnp.float32)
    rm2 = 0.05 * jax.random.normal(km, (C2,), dtype=jnp.float32)
    rv2 = 1.0 + 0.1 * jax.random.uniform(kv, (C2,), dtype=jnp.float32)

    y2 = jax.block_until_ready(frozen_batch_norm_2d(x2, w2, b2, rm2, rv2))
    y2_ref = frozen_batch_norm_2d_ref(x2, w2, b2, rm2, rv2)
    assert y2.shape == (N2, C2, H2, W2) and y2.dtype == x2.dtype
    assert jnp.allclose(y2, y2_ref, atol=1e-5, rtol=1e-5)

    print("KERNEL_OK")
</pallas_src>

<mosaic_0001>
module attributes {stable_mosaic.version = 11 : i64} {
  func.func @frozen_bn_kernel(%arg0: i32, %arg1: i32, %arg2: memref<8x1xf32, #tpu.memory_space<vmem>>, %arg3: memref<8x1xf32, #tpu.memory_space<vmem>>, %arg4: memref<8x256xf32, #tpu.memory_space<vmem>>, %arg5: memref<8x256xf32, #tpu.memory_space<vmem>>) attributes {dimension_semantics = [#tpu.dimension_semantics<parallel>, #tpu.dimension_semantics<parallel>], iteration_bounds = array<i64: 1, 1>, scalar_prefetch = 0 : i64, scratch_operands = 0 : i64, tpu.core_type = #tpu.core_type<tc>, window_params = [{transform_indices = @transform_0, window_bounds = array<i64: 8, 1>}, {transform_indices = @transform_1, window_bounds = array<i64: 8, 1>}, {transform_indices = @transform_2, window_bounds = array<i64: 8, 256>}, {transform_indices = @transform_3, window_bounds = array<i64: 8, 256>}]} {
    %c0 = arith.constant 0 : index
    %c0_0 = arith.constant 0 : index
    %0 = vector.load %arg2[%c0, %c0_0] : memref<8x1xf32, #tpu.memory_space<vmem>>, vector<8x1xf32>
    %c0_1 = arith.constant 0 : index
    %c0_2 = arith.constant 0 : index
    %1 = vector.load %arg3[%c0_1, %c0_2] : memref<8x1xf32, #tpu.memory_space<vmem>>, vector<8x1xf32>
    %c0_3 = arith.constant 0 : index
    %c0_4 = arith.constant 0 : index
    %2 = vector.load %arg4[%c0_3, %c0_4] : memref<8x256xf32, #tpu.memory_space<vmem>>, vector<8x256xf32>
    %3 = vector.broadcast %0 : vector<8x1xf32> to vector<8x256xf32>
    %4 = arith.mulf %2, %3 : vector<8x256xf32>
    %5 = vector.broadcast %1 : vector<8x1xf32> to vector<8x256xf32>
    %6 = arith.addf %4, %5 : vector<8x256xf32>
    %c0_5 = arith.constant 0 : index
    %c0_6 = arith.constant 0 : index
    %7 = vector.load %arg5[%c0_5, %c0_6] : memref<8x256xf32, #tpu.memory_space<vmem>>, vector<8x256xf32>
    tpu.vector_store %arg5[%c0_5, %c0_6], %6 {strides = array<i32>} : memref<8x256xf32, #tpu.memory_space<vmem>>, vector<8x256xf32>,
    return
  }
  func.func @transform_0(%arg0: i32, %arg1: i32) -> (i32, i32) {
    %c0_i32 = arith.constant 0 : i32
    %c0_i32_0 = arith.constant 0 : i32
    return %arg0, %c0_i32 : i32, i32
  }
  func.func @transform_1(%arg0: i32, %arg1: i32) -> (i32, i32) {
    %c0_i32 = arith.constant 0 : i32
    %c0_i32_0 = arith.constant 0 : i32
    return %arg0, %c0_i32 : i32, i32
  }
  func.func @transform_2(%arg0: i32, %arg1: i32) -> (i32, i32) {
    %c0_i32 = arith.constant 0 : i32
    return %arg0, %arg1 : i32, i32
  }
  func.func @transform_3(%arg0: i32, %arg1: i32) -> (i32, i32) {
    %c0_i32 = arith.constant 0 : i32
    return %arg0, %arg1 : i32, i32
  }
}

</mosaic_0001>

<bundles_post_ra>
// kernel: tpu_custom_call.1
= control target key start
LH: loop header
LB: loop body
LE: loop exit
PB: predicated region body
PF: predicated region fallthrough
CT: control target
= control target key end

     0   :  { %v80_v1 = vmov 0   ;;  %s117_s0 = inlined_call_operand.vmem [shape: f32[8,1], index: 0, kind: input, shape index: {}]   ;;  %s118_s1 = inlined_call_operand.vmem [shape: f32[8,1], index: 1, kind: input, shape index: {}]   ;;  %s119_s2 = inlined_call_operand.vmem [shape: f32[8,256], index: 2, kind: input, shape index: {}]   ;;  %s120_s3 = inlined_call_operand.hbm [shape: f32[8,256], index: 3, kind: output, shape index: {}]  }
   0x1   :  { %v15_v0 = vld [vmem:[%s117_s0] sm:$0xff]  ;;  %53 = vset.pattern.permute.xlu0 %v80_v1 }
   0x2   :  { %8 = vsyncpa [#allocation3], 0  ;;  %21 = vperm.xlu0 %53, %v15_v0   ;;  %v16_v2 = vld [vmem:[%s118_s1] sm:$0xff]  ;;  %v18_v5 = vld [vmem:[%s119_s2 + $0x8] sm:$0xff]  ;;  %s81_s0 = smov [#allocation2]   ;;  %s42_s23 = sshll.u32 %s120_s3, 4  ;;  %s43_s23 = int_to_ptr.hbm [resolvable:$true] %s42_s23 }
   0x3   :  { %v17_v4 = vld [vmem:[%s119_s2] sm:$0xff]  ;;  %s40_s20 = sshll.u32 %s81_s0, 4  ;;  %s41_s20 = int_to_ptr.vmem [resolvable:$true] %s40_s20 }
   0xa   :  { %28 = vperm.xlu0 %53, %v16_v2  }
  0x74   :  { %v22_v3 = vpop.permute.xlu0 %21 }
  0x75   :  { %v24_v6 = vmul.f32 %v22_v3, %v17_v4  ;;  %v25_v7 = vmul.f32 %v22_v3, %v18_v5 }
  0x7c   :  { %v29_v8 = vpop.permute.xlu0 %28 }
  0x7d   :  { %v31_v9 = vadd.f32 %v29_v8, %v24_v6  ;;  %v32_v10 = vadd.f32 %v29_v8, %v25_v7 }
  0x7f   :  { %33 = vst [vmem:[#allocation2] sm:$0xff] %v31_v9 }
  0x80   :  { %34 = vst [vmem:[#allocation2 + $0x8] sm:$0xff] %v32_v10 }
  0x81   :  { %45 = dma.vmem_to_hbm [thread:$0]  %s41_s20, 256, %s43_s23, [#allocation3]  }
  0x82   :  { %78 = dma.done.wait [#allocation3], 256  }
  0x83   :  { %79 = vsyncadd [#allocation3], 4294967040 }
  0x84   :  { %50 = vsyncpa [#allocation3], 1 }

</bundles_post_ra>
